<compile_context>
chip_gen: v6e
topology: v6e:2x2x1
jax: 0.10.0
libtpu: 0.0.40
codegen_flags: <defaults>
</compile_context>

<pallas_src>
import jax
import jax.numpy as jnp
from jax.experimental import pallas as pl
from jax.experimental.pallas import tpu as pltpu


def _round_up(x, m):
    return (x + m - 1) // m * m


def _vmem_capacity_bytes():
    """Per-core VMEM capacity; conservative fallback if the query is missing."""
    try:
        info = pltpu.get_tpu_info()
        cap = getattr(info, "vmem_capacity_bytes", None)
        if cap:
            return int(cap)
    except Exception:
        pass
    return 64 * 1024 * 1024   # v7x has only 64 MiB / TensorCore


def _const_spec(shape):
    """BlockSpec for a grid-invariant operand (same block every grid step).

    Requests single-buffering (pl.Buffered(1)) since the block is DMA'd only
    once; falls back to the default double-buffered spec on older jax.
    """
    index_map = lambda i: (0, 0)
    try:
        return pl.BlockSpec(shape, index_map, pipeline_mode=pl.Buffered(1))
    except Exception:
        return pl.BlockSpec(shape, index_map)


def _decoder_kernel(z_ref, w1_ref, b1_ref, w2_ref, b2_ref, w3_ref, b3_ref, out_ref):
    # Three MXU matmuls (f32 accumulation) + VPU bias/ReLU + EUP exp, all
    # resident in VMEM for this batch tile.
    z = z_ref[...]
    h = jnp.dot(z, w1_ref[...], preferred_element_type=jnp.float32) + b1_ref[...]
    h = jnp.maximum(h, 0.0).astype(w2_ref.dtype)
    h = jnp.dot(h, w2_ref[...], preferred_element_type=jnp.float32) + b2_ref[...]
    h = jnp.maximum(h, 0.0).astype(w3_ref.dtype)
    h = jnp.dot(h, w3_ref[...], preferred_element_type=jnp.float32) + b3_ref[...]
    # Exact sigmoid: exp(-h) runs on the EUP; exact reciprocal keeps mu in
    # [0, 1] (safe for downstream Bernoulli log-likelihoods).
    mu = 1.0 / (1.0 + jnp.exp(-h))
    out_ref[...] = mu.astype(out_ref.dtype)


def prepare_params(w1, b1, w2, b2, w3, b3, *,
                   compute_dtype=jnp.bfloat16, feature_align=128):
    """Cast weights to the MXU compute dtype and zero-pad features to lane
    multiples.  Call ONCE and reuse across forwards so the per-call wrapper
    does not re-read/write the full weight matrices in HBM every step.

    Zero padding is exact: padded weight rows/cols and bias entries are zero,
    padded output columns are sliced off by the wrapper.
    feature_align=128 matches the vreg lane width; 256 can give a few % on
    v6e/v7x (256x256 MXU) when hidden/input_dim are large (keep 128 on v5e).
    """
    cdt = jnp.dtype(compute_dtype)
    z_dim, hidden = w1.shape
    input_dim = w3.shape[1]
    zp = _round_up(z_dim, feature_align)
    hp = _round_up(hidden, feature_align)
    ip = _round_up(input_dim, feature_align)

    def prep(a, rows, cols, dtype):
        if a.dtype != dtype:
            a = a.astype(dtype)
        pr, pc = rows - a.shape[0], cols - a.shape[1]
        if pr or pc:
            a = jnp.pad(a, ((0, pr), (0, pc)))
        return a

    # Biases (and all post-matmul math) stay f32 -- v5e has no bf16 VPU/EUP.
    return (prep(w1, zp, hp, cdt), prep(b1, 1, hp, jnp.float32),
            prep(w2, hp, hp, cdt), prep(b2, 1, hp, jnp.float32),
            prep(w3, hp, ip, cdt), prep(b3, 1, ip, jnp.float32))


def linear_observation_decoder(z, w1, b1, w2, b2, w3, b3, *,
                               prepared=None,
                               block_b=None,
                               out_dtype=None,
                               compute_dtype=jnp.bfloat16,
                               feature_align=128):
    """Pallas implementation of LinearObservationDecoder.forward.

    z:  (B, z_dim)
    w1: (z_dim, hidden),    b1: (1, hidden)
    w2: (hidden, hidden),   b2: (1, hidden)
    w3: (hidden, input_dim),b3: (1, input_dim)
    prepared: optional output of prepare_params() (hoists weight cast+pad).
    out_dtype: dtype of mu (default z.dtype; bf16 halves the mu HBM store).
    returns mu: (B, input_dim)
    """
    B, z_dim = z.shape
    hidden = w1.shape[1]
    input_dim = w3.shape[1]
    out_dtype = jnp.dtype(z.dtype if out_dtype is None else out_dtype)

    if prepared is None:
        prepared = prepare_params(w1, b1, w2, b2, w3, b3,
                                  compute_dtype=compute_dtype,
                                  feature_align=feature_align)
    w1p, b1p, w2p, b2p, w3p, b3p = prepared
    cdt = jnp.dtype(w1p.dtype)
    zp, hp = w1p.shape
    ip = w3p.shape[1]

    # Sublane granularity for the batch tile: 8 rows for 32-bit, 16 for bf16.
    sub = 8 if cdt.itemsize == 4 else 16

    # ---- generation-aware VMEM budget ------------------------------------
    cap = int(_vmem_capacity_bytes() * 0.85)      # headroom for compiler scratch
    out_sz = out_dtype.itemsize
    w_bytes = (zp * hp + hp * hp + hp * ip) * cdt.itemsize   # Buffered(1): 1x
    bias_bytes = (2 * hp + ip) * 4

    def _footprint(bb):
        return (w_bytes + bias_bytes
                + 2 * bb * zp * cdt.itemsize      # z tiles (double-buffered)
                + 2 * bb * ip * out_sz            # mu tiles (double-buffered)
                + bb * (2 * hp + ip) * 4)         # live f32 intermediates

    # ---- batch tile selection ---------------------------------------------
    if block_b is None:
        block_b = min(512, _round_up(B, sub))
        if B > sub:
            # Keep >= 2 grid steps so v7x can shard the parallel batch axis
            # across both TensorCores and loads/stores pipeline.
            block_b = min(block_b, _round_up((B + 1) // 2, sub))
    block_b = max(sub, _round_up(block_b, sub))
    # Shrink the tile until the VMEM footprint fits the per-core budget.
    while block_b > sub and _footprint(block_b) > cap:
        block_b = max(sub, _round_up(block_b // 2, sub))

    vmem_limit = int(min(cap, max(_footprint(block_b) * 1.25, 4 * 1024 * 1024)))

    Bp = _round_up(B, block_b)

    # ---- input padding (skipped when already aligned) ----------------------
    z_c = z.astype(cdt) if z.dtype != cdt else z
    if Bp != B or zp != z_dim:
        z_c = jnp.pad(z_c, ((0, Bp - B), (0, zp - z_dim)))

    grid = (Bp // block_b,)
    out_shape = jax.ShapeDtypeStruct((Bp, ip), out_dtype)

    in_specs = [
        pl.BlockSpec((block_b, zp), lambda i: (i, 0)),   # z tile (pipelined)
        _const_spec((zp, hp)),                           # w1 (single-buffered)
        _const_spec((1, hp)),                            # b1
        _const_spec((hp, hp)),                           # w2
        _const_spec((1, hp)),                            # b2
        _const_spec((hp, ip)),                           # w3
        _const_spec((1, ip)),                            # b3
    ]
    out_specs = pl.BlockSpec((block_b, ip), lambda i: (i, 0))

    out = pl.pallas_call(
        _decoder_kernel,
        out_shape=out_shape,
        grid_spec=pltpu.PrefetchScalarGridSpec(
            num_scalar_prefetch=0,
            grid=grid,
            in_specs=in_specs,
            out_specs=out_specs,
        ),
        compiler_params=pltpu.CompilerParams(
            dimension_semantics=("parallel",),
            vmem_limit_bytes=vmem_limit,
        ),
    )(z_c, w1p, b1p, w2p, b2p, w3p, b3p)

    if Bp != B or ip != input_dim:
        out = out[:B, :input_dim]
    return out


def init_params(key, input_dim, z_dim, hidden_dim):
    """Deterministic init mimicking nn.Linear default (uniform +/- 1/sqrt(fan_in)).

    Weights returned in (in_features, out_features) layout.
    """
    def linear(k, fan_in, fan_out):
        kw, kb = jax.random.split(k)
        bound = 1.0 / jnp.sqrt(jnp.float32(fan_in))
        w = jax.random.uniform(kw, (fan_in, fan_out), jnp.float32, -bound, bound)
        b = jax.random.uniform(kb, (1, fan_out), jnp.float32, -bound, bound)
        return w, b

    k1, k2, k3 = jax.random.split(key, 3)
    w1, b1 = linear(k1, z_dim, hidden_dim)
    w2, b2 = linear(k2, hidden_dim, hidden_dim)
    w3, b3 = linear(k3, hidden_dim, input_dim)
    return w1, b1, w2, b2, w3, b3


def reference(z, w1, b1, w2, b2, w3, b3):
    h = jnp.maximum(z @ w1 + b1, 0.0)
    h = jnp.maximum(h @ w2 + b2, 0.0)
    h = h @ w3 + b3
    return jax.nn.sigmoid(h)


if __name__ == "__main__":
    key = jax.random.PRNGKey(0)
    kz, kp = jax.random.split(key)

    # Small shapes consistent with the module.
    batch, z_dim, hidden_dim, input_dim = 32, 8, 32, 16

    z = jax.random.normal(kz, (batch, z_dim), dtype=jnp.float32)
    params = init_params(kp, input_dim, z_dim, hidden_dim)
    mu_ref = reference(z, *params)

    # 1) f32 compute path with a small explicit batch tile -> 4-step grid
    #    (exercises the pipelined / multi-step path).
    mu_f32 = linear_observation_decoder(z, *params, block_b=8,
                                        compute_dtype=jnp.float32)
    mu_f32 = jax.block_until_ready(mu_f32)
    assert mu_f32.shape == (batch, input_dim)
    assert jnp.allclose(mu_f32, mu_ref, atol=5e-3), "f32 path mismatch vs reference"
    assert bool((mu_f32 >= 0.0).all()) and bool((mu_f32 <= 1.0).all())

    # 2) Default bf16-MXU path with weight cast+pad hoisted out of the call
    #    (prepare once, reuse every forward).  Default tiling gives a 2-step
    #    "parallel" batch grid.
    prepared = prepare_params(*params)
    mu_bf16 = linear_observation_decoder(z, *params, prepared=prepared)
    mu_bf16 = jax.block_until_ready(mu_bf16)
    assert mu_bf16.shape == (batch, input_dim)
    assert jnp.allclose(mu_bf16, mu_ref, atol=2e-2), "bf16 path mismatch vs reference"

    # 3) bf16 output store (mu in [0,1] tolerates bf16; halves the mu HBM stream).
    mu_out16 = linear_observation_decoder(z, *params, prepared=prepared,
                                          out_dtype=jnp.bfloat16)
    mu_out16 = jax.block_until_ready(mu_out16)
    assert mu_out16.dtype == jnp.bfloat16
    assert jnp.allclose(mu_out16.astype(jnp.float32), mu_ref, atol=3e-2), \
        "bf16-output path mismatch vs reference"

    print("KERNEL_OK")
</pallas_src>

<mosaic_0001>
module attributes {stable_mosaic.version = 11 : i64} {
  func.func @_decoder_kernel(%arg0: i32, %arg1: memref<8x128xf32, #tpu.memory_space<vmem>>, %arg2: memref<128x128xf32, #tpu.memory_space<vmem>>, %arg3: memref<1x128xf32, #tpu.memory_space<vmem>>, %arg4: memref<128x128xf32, #tpu.memory_space<vmem>>, %arg5: memref<1x128xf32, #tpu.memory_space<vmem>>, %arg6: memref<128x128xf32, #tpu.memory_space<vmem>>, %arg7: memref<1x128xf32, #tpu.memory_space<vmem>>, %arg8: memref<8x128xf32, #tpu.memory_space<vmem>>) attributes {dimension_semantics = [#tpu.dimension_semantics<parallel>], iteration_bounds = array<i64: 4>, scalar_prefetch = 0 : i64, scratch_operands = 0 : i64, tpu.core_type = #tpu.core_type<tc>, window_params = [{transform_indices = @transform_0, window_bounds = array<i64: 8, 128>}, {pipeline_mode = #tpu.pipeline_mode<synchronous>, transform_indices = @transform_1, window_bounds = array<i64: 128, 128>}, {pipeline_mode = #tpu.pipeline_mode<synchronous>, transform_indices = @transform_2, window_bounds = array<i64: 1, 128>}, {pipeline_mode = #tpu.pipeline_mode<synchronous>, transform_indices = @transform_3, window_bounds = array<i64: 128, 128>}, {pipeline_mode = #tpu.pipeline_mode<synchronous>, transform_indices = @transform_4, window_bounds = array<i64: 1, 128>}, {pipeline_mode = #tpu.pipeline_mode<synchronous>, transform_indices = @transform_5, window_bounds = array<i64: 128, 128>}, {pipeline_mode = #tpu.pipeline_mode<synchronous>, transform_indices = @transform_6, window_bounds = array<i64: 1, 128>}, {transform_indices = @transform_7, window_bounds = array<i64: 8, 128>}]} {
    %c0 = arith.constant 0 : index
    %c0_0 = arith.constant 0 : index
    %0 = vector.load %arg1[%c0, %c0_0] : memref<8x128xf32, #tpu.memory_space<vmem>>, vector<8x128xf32>
    %c0_1 = arith.constant 0 : index
    %c0_2 = arith.constant 0 : index
    %1 = vector.load %arg2[%c0_1, %c0_2] : memref<128x128xf32, #tpu.memory_space<vmem>>, vector<128x128xf32>
    %cst = arith.constant dense<0.000000e+00> : vector<8x128xf32>
    %2 = tpu.matmul %0, %1, %cst {dimension_numbers = #tpu.dot_dimension_numbers<[1], [0], [0], [1], [0, 0, 1, 1], [], []>} : vector<8x128xf32>, vector<128x128xf32>, vector<8x128xf32> -> vector<8x128xf32>
    %c0_3 = arith.constant 0 : index
    %c0_4 = arith.constant 0 : index
    %3 = vector.load %arg3[%c0_3, %c0_4] : memref<1x128xf32, #tpu.memory_space<vmem>>, vector<1x128xf32>
    %4 = vector.broadcast %3 : vector<1x128xf32> to vector<8x128xf32>
    %5 = arith.addf %2, %4 : vector<8x128xf32>
    %cst_5 = arith.constant 0.000000e+00 : f32
    %6 = vector.broadcast %cst_5 : f32 to vector<8x128xf32>
    %7 = arith.maximumf %5, %6 : vector<8x128xf32>
    %c0_6 = arith.constant 0 : index
    %c0_7 = arith.constant 0 : index
    %8 = vector.load %arg4[%c0_6, %c0_7] : memref<128x128xf32, #tpu.memory_space<vmem>>, vector<128x128xf32>
    %cst_8 = arith.constant dense<0.000000e+00> : vector<8x128xf32>
    %9 = tpu.matmul %7, %8, %cst_8 {dimension_numbers = #tpu.dot_dimension_numbers<[1], [0], [0], [1], [0, 0, 1, 1], [], []>} : vector<8x128xf32>, vector<128x128xf32>, vector<8x128xf32> -> vector<8x128xf32>
    %c0_9 = arith.constant 0 : index
    %c0_10 = arith.constant 0 : index
    %10 = vector.load %arg5[%c0_9, %c0_10] : memref<1x128xf32, #tpu.memory_space<vmem>>, vector<1x128xf32>
    %11 = vector.broadcast %10 : vector<1x128xf32> to vector<8x128xf32>
    %12 = arith.addf %9, %11 : vector<8x128xf32>
    %cst_11 = arith.constant 0.000000e+00 : f32
    %13 = vector.broadcast %cst_11 : f32 to vector<8x128xf32>
    %14 = arith.maximumf %12, %13 : vector<8x128xf32>
    %c0_12 = arith.constant 0 : index
    %c0_13 = arith.constant 0 : index
    %15 = vector.load %arg6[%c0_12, %c0_13] : memref<128x128xf32, #tpu.memory_space<vmem>>, vector<128x128xf32>
    %cst_14 = arith.constant dense<0.000000e+00> : vector<8x128xf32>
    %16 = tpu.matmul %14, %15, %cst_14 {dimension_numbers = #tpu.dot_dimension_numbers<[1], [0], [0], [1], [0, 0, 1, 1], [], []>} : vector<8x128xf32>, vector<128x128xf32>, vector<8x128xf32> -> vector<8x128xf32>
    %c0_15 = arith.constant 0 : index
    %c0_16 = arith.constant 0 : index
    %17 = vector.load %arg7[%c0_15, %c0_16] : memref<1x128xf32, #tpu.memory_space<vmem>>, vector<1x128xf32>
    %18 = vector.broadcast %17 : vector<1x128xf32> to vector<8x128xf32>
    %19 = arith.addf %16, %18 : vector<8x128xf32>
    %cst_17 = arith.constant 0.000000e+00 : f32
    %20 = vector.broadcast %cst_17 : f32 to vector<8x128xf32>
    %21 = arith.subf %20, %19 : vector<8x128xf32>
    %22 = math.exp %21 : vector<8x128xf32>
    %cst_18 = arith.constant 1.000000e+00 : f32
    %23 = vector.broadcast %cst_18 : f32 to vector<8x128xf32>
    %24 = arith.addf %23, %22 : vector<8x128xf32>
    %cst_19 = arith.constant 1.000000e+00 : f32
    %25 = vector.broadcast %cst_19 : f32 to vector<8x128xf32>
    %26 = arith.divf %25, %24 : vector<8x128xf32>
    %c0_20 = arith.constant 0 : index
    %c0_21 = arith.constant 0 : index
    %27 = vector.load %arg8[%c0_20, %c0_21] : memref<8x128xf32, #tpu.memory_space<vmem>>, vector<8x128xf32>
    tpu.vector_store %arg8[%c0_20, %c0_21], %26 {strides = array<i32>} : memref<8x128xf32, #tpu.memory_space<vmem>>, vector<8x128xf32>,
    return
  }
  func.func @transform_0(%arg0: i32) -> (i32, i32) {
    %c0_i32 = arith.constant 0 : i32
    %c0_i32_0 = arith.constant 0 : i32
    return %arg0, %c0_i32 : i32, i32
  }
  func.func @transform_1(%arg0: i32) -> (i32, i32) {
    %c0_i32 = arith.constant 0 : i32
    %c0_i32_0 = arith.constant 0 : i32
    %c0_i32_1 = arith.constant 0 : i32
    return %c0_i32, %c0_i32_0 : i32, i32
  }
  func.func @transform_2(%arg0: i32) -> (i32, i32) {
    %c0_i32 = arith.constant 0 : i32
    %c0_i32_0 = arith.constant 0 : i32
    %c0_i32_1 = arith.constant 0 : i32
    return %c0_i32, %c0_i32_0 : i32, i32
  }
  func.func @transform_3(%arg0: i32) -> (i32, i32) {
    %c0_i32 = arith.constant 0 : i32
    %c0_i32_0 = arith.constant 0 : i32
    %c0_i32_1 = arith.constant 0 : i32
    return %c0_i32, %c0_i32_0 : i32, i32
  }
  func.func @transform_4(%arg0: i32) -> (i32, i32) {
    %c0_i32 = arith.constant 0 : i32
    %c0_i32_0 = arith.constant 0 : i32
    %c0_i32_1 = arith.constant 0 : i32
    return %c0_i32, %c0_i32_0 : i32, i32
  }
  func.func @transform_5(%arg0: i32) -> (i32, i32) {
    %c0_i32 = arith.constant 0 : i32
    %c0_i32_0 = arith.constant 0 : i32
    %c0_i32_1 = arith.constant 0 : i32
    return %c0_i32, %c0_i32_0 : i32, i32
  }
  func.func @transform_6(%arg0: i32) -> (i32, i32) {
    %c0_i32 = arith.constant 0 : i32
    %c0_i32_0 = arith.constant 0 : i32
    %c0_i32_1 = arith.constant 0 : i32
    return %c0_i32, %c0_i32_0 : i32, i32
  }
  func.func @transform_7(%arg0: i32) -> (i32, i32) {
    %c0_i32 = arith.constant 0 : i32
    %c0_i32_0 = arith.constant 0 : i32
    return %arg0, %c0_i32 : i32, i32
  }
}

</mosaic_0001>

<bundles_post_ra>
// kernel: tpu_custom_call.1
= control target key start
LH: loop header
LB: loop body
LE: loop exit
PB: predicated region body
PF: predicated region fallthrough
CT: control target
= control target key end

     0   :  { %s1482_s0 = inlined_call_operand.hbm [shape: f32[32,128], index: 0, kind: input, shape index: {}]   ;;  %s1483_s1 = inlined_call_operand.hbm [shape: f32[128,128], index: 1, kind: input, shape index: {}]   ;;  %s1484_s2 = inlined_call_operand.vmem [shape: f32[1,128], index: 2, kind: input, shape index: {}]   ;;  %s1485_s3 = inlined_call_operand.hbm [shape: f32[128,128], index: 3, kind: input, shape index: {}]   ;;  %s1486_s4 = inlined_call_operand.vmem [shape: f32[1,128], index: 4, kind: input, shape index: {}]   ;;  %s1487_s5 = inlined_call_operand.hbm [shape: f32[128,128], index: 5, kind: input, shape index: {}]   ;;  %s1488_s6 = inlined_call_operand.vmem [shape: f32[1,128], index: 6, kind: input, shape index: {}]   ;;  %s1489_s7 = inlined_call_operand.hbm [shape: f32[32,128], index: 7, kind: output, shape index: {}]  }
   0x1   :  { %1494 = sst [smem:[#allocation15_spill]] %s1483_s1 }
   0x2   :  { %1495 = sst [smem:[#allocation16_spill]] %s1485_s3 }
   0x3   :  { %12 = vsyncpa [#allocation3], 0 }
   0x4   :  { %14 = vsyncpa [#allocation3 + $0x1], 0 }
   0x5   :  { %15 = vsyncpa [#allocation6], 0 }
   0x6   :  { %16 = vsyncpa [#allocation9], 0 }
   0x7   :  { %17 = vsyncpa [#allocation4], 0 }
   0x8   :  { %19 = vsyncpa [#allocation4 + $0x1], 0  ;;  %s1231_s24 = smov 0   ;;  %s1233_s25 = smov 0  }
   0x9   :  { %s1235_s26 = smov 0   ;;  %s1237_s27 = smov 0  }
   0xa LB: > { %s1252_s28 = sadd.s32 4294967295, %s1180_s27   ;;  %s740_s29 = sadd.s32 4294967294, %s1180_s27   ;;  %s1180_s27 = sphi %s1237_s27, %s1516_s27   ;;  %s1176_s26 = sphi %s1235_s26, %s1515_s26   ;;  %s1172_s25 = sphi %s1233_s25, %s1514_s25   ;;  %s1168_s24 = sphi %s1231_s24, %s1513_s24  }
   0xb   : > { %p45_p0 = scmp.ne.s32.totalorder %s1172_s25, %s1168_s24  ;;  %p1490_p1 = scmp.eq.s32.totalorder %s1252_s28, 0 }
   0xc   : > { %p201_p3 = scmp.eq.s32.totalorder %s740_s29, 3  ;;  %p741_p5 = scmp.ge.s32.totalorder %s1180_s27, 1 }
   0xd   : > { %p1261_p4 = por %p1490_p1, %p45_p0  ;;  %p208_p7 = scmp.lt.s32.totalorder %s1180_s27, 5 }
   0xe   : > { %p1266_p6 = por %p201_p3, %p45_p0  ;;  %s1182_s10 = smov [#allocation5]  }
   0xf   : > { %s1496_s30 = scalar_select %p1261_p4, 1, 0 }
  0x10   : > { %s1497_s8 = scalar_select %p1266_p6, 1, 0 }
  0x11   : > { %p1271_p8 = pnand %p741_p5, %p208_p7  ;;  %s220_s11 = sshll.u32 %s1182_s10, 4  ;;  %s221_s11 = int_to_ptr.vmem [resolvable:$true] %s220_s11 }
  0x12   : > { %s1183_s13 = smov [#allocation7]   ;;  %s1184_s15 = smov [#allocation8]  }
  0x13   : > { %s1498_s9 = scalar_select %p1271_p8, 1, 0 }
  0x14   : > { %p933_p9 = pneg %p1271_p8  ;;  %s236_s14 = sshll.u32 %s1183_s13, 4  ;;  %s237_s14 = int_to_ptr.vmem [resolvable:$true] %s236_s14 }
  0x15   : > { %s252_s16 = sshll.u32 %s1184_s15, 4  ;;  %s1013_s17 = scalar_lea.vmem %s221_s11, 2048  ;;  %s253_s16 = int_to_ptr.vmem [resolvable:$true] %s252_s16 }
  0x16   : > { %p1279_p10 = pnand %p933_p9, %p1490_p1  ;;  %p1014_p12 = scmp.ne.s32.totalorder %s221_s11, %s1013_s17 }
  0x17   : > { %p1021_p3 = scmp.lt.s32.totalorder %s221_s11, %s221_s11  ;;  %p1022_p5 = scmp.lt.s32.totalorder %s1013_s17, %s1013_s17 }
  0x18   : > { %p1004_p11 = pneg %p1279_p10 }
  0x19   : > { %p1023_p7 = por %p1022_p5, %p1021_p3 }
  0x1a   : > { %p1016_p13 = pnand %p1014_p12, %p1004_p11 }
  0x1c   : > { %p1017_p0 = pneg %p1016_p13 }
  0x1e   : > { %p1024_p9 = pnand %p1023_p7, %p1017_p0 }
  0x20   : > { %1027 = shalt.err (!%p1024_p9)
}
  0x21   : > { %s1185_s18 = smov 128   ;;  %s1186_s19 = smov 8  }
  0x22   : > { %s1500_s1 = sld [smem:[#allocation15_spill]]  ;;  %s1039_s22 = scalar_lea.vmem %s237_s14, 2048 }
  0x23   : > { %p1040_p1 = scmp.ne.s32.totalorder %s237_s14, %s1039_s22  ;;  %p1047_p2 = scmp.lt.s32.totalorder %s237_s14, %s237_s14 }
  0x24   : > { %p1048_p6 = scmp.lt.s32.totalorder %s1039_s22, %s1039_s22 }
  0x25   : > { %p1042_p12 = pnand %p1040_p1, %p1004_p11 }
  0x26   : > { %p1049_p3 = por %p1048_p6, %p1047_p2 }
  0x27   : > { %p1043_p13 = pneg %p1042_p12 }
  0x28   : > { %936 = dma.hbm_to_vmem [thread:$0]  (!%p1279_p10), %s1500_s1, 2048, %s221_s11, [#allocation6], %s1185_s18, %s1185_s18, %s1186_s19  }
  0x29   : > { %p1050_p0 = pnand %p1049_p3, %p1043_p13 }
  0x2b   : > { %1053 = shalt.err (!%p1050_p0)
}
  0x2c   : > { %s1501_s3 = sld [smem:[#allocation16_spill]]  ;;  %s1065_s10 = scalar_lea.vmem %s253_s16, 2048 }
  0x2d   : > { %p1066_p5 = scmp.ne.s32.totalorder %s253_s16, %s1065_s10  ;;  %p1073_p9 = scmp.lt.s32.totalorder %s253_s16, %s253_s16 }
  0x2e   : > { %p1074_p12 = scmp.lt.s32.totalorder %s1065_s10, %s1065_s10 }
  0x2f   : > { %p1068_p7 = pnand %p1066_p5, %p1004_p11 }
  0x30   : > { %p1075_p4 = por %p1074_p12, %p1073_p9 }
  0x31   : > { %p1069_p1 = pneg %p1068_p7 }
  0x32   : > { %939 = dma.hbm_to_vmem [thread:$0]  (!%p1279_p10), %s1501_s3, 2048, %s237_s14, [#allocation6], %s1185_s18, %s1185_s18, %s1186_s19  }
  0x33   : > { %p1076_p2 = pnand %p1075_p4, %p1069_p1 }
  0x35   : > { %1079 = shalt.err (!%p1076_p2)
}
  0x36   : > { %942 = dma.hbm_to_vmem [thread:$0]  (!%p1279_p10), %s1487_s5, 2048, %s253_s16, [#allocation9], %s1185_s18, %s1185_s18, %s1186_s19  }
  0x37   : > { %s1310_s14 = sadd.s32 1, %s1180_s27   ;;  %s32_s12 = sadd.s32 1, %s1176_s26 }
  0x38   : > { %s29_s15 = ssub.s32 %s1180_s27, %s1310_s14  ;;  %p39_p6 = scmp.ne.s32.totalorder %s1176_s26, %s1172_s25 }
  0x39   : > { %p30_p4 = scmp.eq.s32.totalorder %s29_s15, 0  ;;  %p40_p11 = scmp.eq.s32.totalorder %s1180_s27, 0 }
  0x3a   : > { %p954_p13 = scmp.lt.s32.totalorder %s1180_s27, 4  ;;  %p1502_p0 = scmp.eq.s32.totalorder %s1252_s28, 3 }
  0x3b   : > { %s1320_s17 = scalar_select %p30_p4, %s1176_s26, %s32_s12  }
  0x3c   : > { %p41_p3 = por %p40_p11, %p39_p6  ;;  %p1324_p5 = por %p1502_p0, %p39_p6 }
  0x3d   : > { %s269_s21 = sand.u32 1, %s1176_s26   ;;  %s747_s22 = sshll.u32 %s1180_s27, 7 }
  0x3e   : > { %s1503_s20 = scalar_select %p1324_p5, 1, 0 }
  0x3f   : > { %s746_s16 = sshll.u32 %s269_s21, 3  ;;  %s1333_s23 = scalar_lea.hbm %s1482_s0, %s747_s22 }
  0x40   : > { %s273_s29 = scalar_lea.vmem [#allocation2], %s746_s16  ;;  %p1335_p10 = pnand %p954_p13, %p41_p3 }
  0x41   : > { %s280_s10 = sshll.u32 %s273_s29, 4  ;;  %s270_s13 = scalar_lea.sflag [#allocation3], %s269_s21  ;;  %s281_s10 = int_to_ptr.vmem [resolvable:$true] %s280_s10 }
  0x42   : > { %s1080_s15 = scalar_lea.hbm %s1333_s23, 128  ;;  %p1082_p1 = pneg %p1335_p10 }
  0x43   : > { %p1081_p7 = scmp.ne.s32.totalorder %s1333_s23, %s1080_s15  ;;  %s1085_s18 = scalar_lea.hbm %s1482_s0, 512 }
  0x44   : > { %p1086_p2 = scmp.lt.s32.totalorder %s1333_s23, %s1482_s0  ;;  %p1087_p4 = scmp.lt.s32.totalorder %s1085_s18, %s1080_s15 }
  0x45   : > { %p1083_p9 = pnand %p1082_p1, %p1081_p7 }
  0x46   : > { %p1088_p6 = por %p1087_p4, %p1086_p2 }
  0x47   : > { %p1084_p12 = pneg %p1083_p9 }
  0x49   : > { %p1089_p11 = pnand %p1088_p6, %p1084_p12 }
  0x4b   : > { %1092 = shalt.err (!%p1089_p11)
}
  0x4c   : > { %s1093_s29 = scalar_lea.vmem %s281_s10, 128  ;;  %s1187_s21 = smov [#allocation2]  }
  0x4d   : > { %p1094_p13 = scmp.ne.s32.totalorder %s281_s10, %s1093_s29  ;;  %s1098_s1 = sshll.u32 %s1187_s21, 4  ;;  %s1099_s1 = int_to_ptr.vmem [resolvable:$false] %s1098_s1 }
  0x4e   : > { %s1100_s3 = scalar_lea.vmem %s1099_s1, 256  ;;  %p1101_p7 = scmp.lt.s32.totalorder %s281_s10, %s1099_s1 }
  0x4f   : > { %p1096_p3 = pnand %p1094_p13, %p1082_p1  ;;  %p1102_p9 = scmp.lt.s32.totalorder %s1100_s3, %s1093_s29 }
  0x51   : > { %p1097_p0 = pneg %p1096_p3  ;;  %p1103_p5 = por %p1102_p9, %p1101_p7 }
  0x53   : > { %p1104_p8 = pnand %p1103_p5, %p1097_p0 }
  0x55   : > { %1107 = shalt.err (!%p1104_p8)
}
  0x56   : > { %946 = dma.hbm_to_vmem [thread:$0]  (!%p1335_p10), %s1333_s23, 128, %s281_s10, %s270_s13  }
  0x57   : > { %p1505_p12 = scmp.ne.s32.totalorder %s1498_s9, 0 }
  0x58   : > { %s1356_s15 = sand.u32 (!%p1505_p12), 1, %s1172_s25   ;;  %p1506_p8 = scmp.ne.s32.totalorder (!%p1505_p12), %s1496_s30, 0 }
  0x59   : > { %289 = sbr.rel (%p1505_p12) target bundleno = 771 (0x303), region = 48  ;;  %s749_s12 = sshll.u32 (!%p1505_p12), %s1356_s15, 3 }
  0x5a   : > { %s292_s1 = scalar_lea.sflag (!%p1505_p12), [#allocation3], %s1356_s15  ;;  %s1362_s3 = scalar_lea.vmem (!%p1505_p12), [#allocation2], %s749_s12 }
  0x5e   : > { %1151 = dma.done.wait (%p1506_p8), %s292_s1, 128  }
  0x5f   : > { %1153 = vsyncadd (%p1506_p8), %s292_s1, 4294967168  ;;  %p1507_p5 = scmp.eq.s32.totalorder %s1252_s28, 0 }
  0x61   : > { %1155 = dma.done.wait (%p1507_p5), [#allocation6], 4096   ;;  %p1508_p10 = pmov %p1507_p5 }
  0x62   : > { %p1509_p1 = pmov %p1507_p5 }
  0x63   : > { %1157 = vsyncadd (%p1508_p10), [#allocation6], 4294963200 }
  0x64   : > { %1159 = dma.done.wait (%p1509_p1), [#allocation9], 2048   ;;  %p1510_p2 = pmov %p1509_p1 }
  0x65   : > { %v1188_v0 = vmov 0.0   ;;  %vm1189_vm0 = vmmov 0   ;;  %v354_v1 = vld [vmem:[#allocation5 + $0x78] sm:$0xff]  ;;  %v353_v2 = vld [vmem:[#allocation5 + $0x70] sm:$0xff]  ;;  %v352_v3 = vld [vmem:[#allocation5 + $0x68] sm:$0xff]  ;;  %s758_s22 = sshll.u32 %s1252_s28, 7 }
  0x66   : > { %1161 = vsyncadd (%p1510_p2), [#allocation9], 4294965248  ;;  %812 = vmatprep.subr.mxu0 %v1188_v0  ;;  %844 = vmatprep.mubr.msk.f32.mxu0 %vm1189_vm0, %v1188_v0  ;;  %v351_v4 = vld [vmem:[#allocation5 + $0x60] sm:$0xff]  ;;  %v448_v5 = vld [vmem:[#allocation7 + $0x78] sm:$0xff]  ;;  %s337_s18 = scalar_lea.vmem [#allocation10], %s749_s12  ;;  %s1446_s21 = scalar_lea.hbm %s1489_s7, %s758_s22 }
  0x67   : > { %847 = vmatprep.subr.mxu1 %v1188_v0  ;;  %879 = vmatprep.mubr.msk.f32.mxu1 %vm1189_vm0, %v1188_v0  ;;  %v350_v6 = vld [vmem:[#allocation5 + $0x58] sm:$0xff]  ;;  %v447_v7 = vld [vmem:[#allocation7 + $0x70] sm:$0xff]  ;;  %v446_v8 = vld [vmem:[#allocation7 + $0x68] sm:$0xff]  ;;  %s641_s19 = sshll.u32 %s337_s18, 4  ;;  %s628_s1 = scalar_lea.sflag [#allocation4], %s1356_s15  ;;  %s642_s19 = int_to_ptr.vmem [resolvable:$true] %s641_s19 }
  0x68   : > { %813 = vmatpush3.msra.mxu0 %v354_v1  ;;  %848 = vmatpush3.msra.mxu1 %v448_v5  ;;  %v349_v9 = vld [vmem:[#allocation5 + $0x50] sm:$0xff]  ;;  %v445_v10 = vld [vmem:[#allocation7 + $0x60] sm:$0xff]  ;;  %v348_v11 = vld [vmem:[#allocation5 + $0x48] sm:$0xff]  ;;  %p1511_p6 = scmp.ne.s32.totalorder %s1503_s20, 0  ;;  %s1190_s30 = smov [#allocation10]  }
  0x69   : > { %814 = vmatprep.subr.mxu0 %v1188_v0  ;;  %849 = vmatprep.subr.mxu1 %v1188_v0  ;;  %v444_v12 = vld [vmem:[#allocation7 + $0x58] sm:$0xff]  ;;  %v347_v13 = vld [vmem:[#allocation5 + $0x40] sm:$0xff]  ;;  %v443_v14 = vld [vmem:[#allocation7 + $0x50] sm:$0xff]  ;;  %s1112_s9 = sshll.u32 %s1190_s30, 4  ;;  %s1113_s9 = int_to_ptr.vmem [resolvable:$false] %s1112_s9 }
  0x6a   : > { %815 = vmatpush3.msra.mxu0 %v353_v2  ;;  %850 = vmatpush3.msra.mxu1 %v447_v7  ;;  %v346_v15 = vld [vmem:[#allocation5 + $0x38] sm:$0xff]  ;;  %v442_v16 = vld [vmem:[#allocation7 + $0x48] sm:$0xff]  ;;  %v345_v17 = vld [vmem:[#allocation5 + $0x30] sm:$0xff]  ;;  %s1114_s28 = scalar_lea.vmem %s1113_s9, 256  ;;  %p1115_p3 = scmp.lt.s32.totalorder %s642_s19, %s1113_s9 }
  0x6b   : > { %816 = vmatprep.subr.mxu0 %v1188_v0  ;;  %851 = vmatprep.subr.mxu1 %v1188_v0  ;;  %v441_v18 = vld [vmem:[#allocation7 + $0x40] sm:$0xff]  ;;  %v344_v19 = vld [vmem:[#allocation5 + $0x28] sm:$0xff]  ;;  %v440_v20 = vld [vmem:[#allocation7 + $0x38] sm:$0xff] }
  0x6c   : > { %817 = vmatpush3.msra.mxu0 %v352_v3  ;;  %852 = vmatpush3.msra.mxu1 %v446_v8  ;;  %v343_v21 = vld [vmem:[#allocation5 + $0x20] sm:$0xff]  ;;  %v439_v22 = vld [vmem:[#allocation7 + $0x30] sm:$0xff]  ;;  %v342_v23 = vld [vmem:[#allocation5 + $0x18] sm:$0xff] }
  0x6d   : > { %818 = vmatprep.subr.mxu0 %v1188_v0  ;;  %853 = vmatprep.subr.mxu1 %v1188_v0  ;;  %v438_v24 = vld [vmem:[#allocation7 + $0x28] sm:$0xff]  ;;  %v341_v25 = vld [vmem:[#allocation5 + $0x10] sm:$0xff]  ;;  %v437_v26 = vld [vmem:[#allocation7 + $0x20] sm:$0xff] }
  0x6e   : > { %819 = vmatpush3.msra.mxu0 %v351_v4  ;;  %854 = vmatpush3.msra.mxu1 %v445_v10  ;;  %v340_v27 = vld [vmem:[#allocation5 + $0x8] sm:$0xff]  ;;  %v436_v28 = vld [vmem:[#allocation7 + $0x18] sm:$0xff]  ;;  %v339_v29 = vld [vmem:[#allocation5] sm:$0xff] }
  0x6f   : > { %820 = vmatprep.subr.mxu0 %v1188_v0  ;;  %855 = vmatprep.subr.mxu1 %v1188_v0  ;;  %v338_v30 = vld [vmem:[%s1362_s3] sm:$0xff]  ;;  %v434_v32 = vld [vmem:[#allocation7 + $0x8] sm:$0xff]  ;;  %v433_v33 = vld [vmem:[#allocation7] sm:$0xff]  ;;  %s1108_s3 = scalar_lea.vmem %s642_s19, 128 }
  0x70   : > { %821 = vmatpush3.msra.mxu0 %v350_v6  ;;  %856 = vmatpush3.msra.mxu1 %v444_v12  ;;  %v435_v31 = vld [vmem:[#allocation7 + $0x10] sm:$0xff]  ;;  %v542_v34 = vld [vmem:[#allocation8 + $0x78] sm:$0xff]  ;;  %v540_v36 = vld [vmem:[#allocation8 + $0x68] sm:$0xff]  ;;  %p1109_p4 = scmp.ne.s32.totalorder %s642_s19, %s1108_s3  ;;  %p1116_p0 = scmp.lt.s32.totalorder %s1114_s28, %s1108_s3 }
  0x71   : > { %822 = vmatprep.subr.mxu0 %v1188_v0  ;;  %857 = vmatprep.subr.mxu1 %v1188_v0  ;;  %v541_v35 = vld [vmem:[#allocation8 + $0x70] sm:$0xff]  ;;  %v539_v37 = vld [vmem:[#allocation8 + $0x60] sm:$0xff]  ;;  %v538_v38 = vld [vmem:[#allocation8 + $0x58] sm:$0xff] }
  0x72   : > { %823 = vmatpush3.msra.mxu0 %v349_v9  ;;  %858 = vmatpush3.msra.mxu1 %v443_v14  ;;  %v537_v39 = vld [vmem:[#allocation8 + $0x50] sm:$0xff]  ;;  %v536_v40 = vld [vmem:[#allocation8 + $0x48] sm:$0xff]  ;;  %v535_v41 = vld [vmem:[#allocation8 + $0x40] sm:$0xff]  ;;  %p1110_p11 = pnand %p1109_p4, %p1511_p6  ;;  %p1117_p7 = por %p1116_p0, %p1115_p3 }
  0x73   : > { %824 = vmatprep.subr.mxu0 %v1188_v0  ;;  %859 = vmatprep.subr.mxu1 %v1188_v0  ;;  %v534_v42 = vld [vmem:[#allocation8 + $0x38] sm:$0xff]  ;;  %v533_v43 = vld [vmem:[#allocation8 + $0x30] sm:$0xff]  ;;  %v532_v44 = vld [vmem:[#allocation8 + $0x28] sm:$0xff] }
  0x74   : > { %825 = vmatpush3.msra.mxu0 %v348_v11  ;;  %860 = vmatpush3.msra.mxu1 %v442_v16  ;;  %v531_v45 = vld [vmem:[#allocation8 + $0x20] sm:$0xff]  ;;  %v530_v46 = vld [vmem:[#allocation8 + $0x18] sm:$0xff]  ;;  %v754_v47 = vld [vmem:[%s1484_s2] ss:$0 sm:$0xff]  ;;  %p1111_p13 = pneg %p1110_p11 }
  0x75   : > { %826 = vmatprep.subr.mxu0 %v1188_v0  ;;  %861 = vmatprep.subr.mxu1 %v1188_v0  ;;  %v529_v52 = vld [vmem:[#allocation8 + $0x10] sm:$0xff]  ;;  %v528_v53 = vld [vmem:[#allocation8 + $0x8] sm:$0xff]  ;;  %v527_v54 = vld [vmem:[#allocation8] sm:$0xff] }
  0x76   : > { %827 = vmatpush3.msra.mxu0 %v347_v13  ;;  %862 = vmatpush3.msra.mxu1 %v441_v18  ;;  %v755_v55 = vld [vmem:[%s1486_s4] ss:$0 sm:$0xff]  ;;  %p1118_p9 = pnand %p1117_p7, %p1111_p13 }
  0x77   : > { %828 = vmatprep.subr.mxu0 %v1188_v0  ;;  %863 = vmatprep.subr.mxu1 %v1188_v0  ;;  %v756_v60 = vld [vmem:[%s1488_s6] ss:$0 sm:$0xff] }
  0x78   : > { %829 = vmatpush3.msra.mxu0 %v346_v15  ;;  %864 = vmatpush3.msra.mxu1 %v440_v20 }
  0x79   : > { %830 = vmatprep.subr.mxu0 %v1188_v0  ;;  %865 = vmatprep.subr.mxu1 %v1188_v0 }
  0x7a   : > { %831 = vmatpush3.msra.mxu0 %v345_v17  ;;  %866 = vmatpush3.msra.mxu1 %v439_v22 }
  0x7b   : > { %832 = vmatprep.subr.mxu0 %v1188_v0  ;;  %867 = vmatprep.subr.mxu1 %v1188_v0 }
  0x7c   : > { %833 = vmatpush3.msra.mxu0 %v344_v19  ;;  %868 = vmatpush3.msra.mxu1 %v438_v24 }
  0x7d   : > { %834 = vmatprep.subr.mxu0 %v1188_v0  ;;  %869 = vmatprep.subr.mxu1 %v1188_v0 }
  0x7e   : > { %835 = vmatpush3.msra.mxu0 %v343_v21  ;;  %870 = vmatpush3.msra.mxu1 %v437_v26 }
  0x7f   : > { %836 = vmatprep.subr.mxu0 %v1188_v0  ;;  %871 = vmatprep.subr.mxu1 %v1188_v0 }
  0x80   : > { %837 = vmatpush3.msra.mxu0 %v342_v23  ;;  %872 = vmatpush3.msra.mxu1 %v436_v28 }
  0x81   : > { %838 = vmatprep.subr.mxu0 %v1188_v0  ;;  %873 = vmatprep.subr.mxu1 %v1188_v0 }
  0x82   : > { %839 = vmatpush3.msra.mxu0 %v341_v25  ;;  %874 = vmatpush3.msra.mxu1 %v435_v31 }
  0x83   : > { %840 = vmatprep.subr.mxu0 %v1188_v0  ;;  %875 = vmatprep.subr.mxu1 %v1188_v0 }
  0x84   : > { %841 = vmatpush3.msra.mxu0 %v340_v27  ;;  %876 = vmatpush3.msra.mxu1 %v434_v32 }
  0x85   : > { %842 = vmatprep.subr.mxu0 %v1188_v0  ;;  %877 = vmatprep.subr.mxu1 %v1188_v0 }
  0x86   : > { %843 = vmatpush3.msra.mxu0 %v339_v29  ;;  %878 = vmatpush3.msra.mxu1 %v433_v33 }
  0x87   : > { %845 = vmatmul.mubr.f32.vlgmr.msra.gmra.mxu0 %v338_v30  ;;  %882 = vmatprep.subr.mxu0 %v1188_v0 }
  0x88   : > { %914 = vmatprep.mubr.msk.f32.mxu0 %vm1189_vm0, %v1188_v0  ;;  %883 = vmatpush3.msra.mxu0 %v542_v34 }
  0x89   : > { %884 = vmatprep.subr.mxu0 %v1188_v0 }
  0x8a   : > { %885 = vmatpush3.msra.mxu0 %v541_v35 }
  0x8b   : > { %886 = vmatprep.subr.mxu0 %v1188_v0 }
  0x8c   : > { %887 = vmatpush3.msra.mxu0 %v540_v36 }
  0x8d   : > { %888 = vmatprep.subr.mxu0 %v1188_v0 }
  0x8e   : > { %889 = vmatpush3.msra.mxu0 %v539_v37 }
  0x8f   : > { %890 = vmatprep.subr.mxu0 %v1188_v0 }
  0x90   : > { %891 = vmatpush3.msra.mxu0 %v538_v38 }
  0x91   : > { %892 = vmatprep.subr.mxu0 %v1188_v0 }
  0x92   : > { %893 = vmatpush3.msra.mxu0 %v537_v39 }
  0x93   : > { %894 = vmatprep.subr.mxu0 %v1188_v0 }
  0x94   : > { %895 = vmatpush3.msra.mxu0 %v536_v40 }
  0x95   : > { %896 = vmatprep.subr.mxu0 %v1188_v0 }
  0x96   : > { %897 = vmatpush3.msra.mxu0 %v535_v41 }
  0x97   : > { %898 = vmatprep.subr.mxu0 %v1188_v0 }
  0x98   : > { %899 = vmatpush3.msra.mxu0 %v534_v42 }
  0x99   : > { %900 = vmatprep.subr.mxu0 %v1188_v0 }
  0x9a   : > { %901 = vmatpush3.msra.mxu0 %v533_v43 }
  0x9b   : > { %902 = vmatprep.subr.mxu0 %v1188_v0 }
  0x9c   : > { %903 = vmatpush3.msra.mxu0 %v532_v44 }
  0x9d   : > { %904 = vmatprep.subr.mxu0 %v1188_v0 }
  0x9e   : > { %905 = vmatpush3.msra.mxu0 %v531_v45 }
  0x9f   : > { %906 = vmatprep.subr.mxu0 %v1188_v0 }
  0xa0   : > { %907 = vmatpush3.msra.mxu0 %v530_v46 }
  0xa1   : > { %908 = vmatprep.subr.mxu0 %v1188_v0 }
  0xa2   : > { %909 = vmatpush3.msra.mxu0 %v529_v52 }
  0xa3   : > { %910 = vmatprep.subr.mxu0 %v1188_v0 }
  0xa4   : > { %911 = vmatpush3.msra.mxu0 %v528_v53 }
  0xa5   : > { %912 = vmatprep.subr.mxu0 %v1188_v0 }
  0xa6   : > { %913 = vmatpush3.msra.mxu0 %v527_v54 }
 0x147   : > { %v428_v48 = vpop.f32.mrf.mxu0 }
 0x148   : > { %v429_v49 = vadd.f32 %v754_v47, %v428_v48 }
 0x149   : > { %v846_v50 = vpop.f32.mrf.mxu0 }
 0x14a   : > { %v432_v51 = vmax.f32 %v429_v49, 0.0 }
 0x14c   : > { %880 = vmatmul.mubr.f32.vlgmr.msra.gmra.mxu1 %v432_v51 }
 0x20c   : > { %v522_v56 = vpop.f32.mrf.mxu1 }
 0x20d   : > { %v523_v57 = vadd.f32 %v755_v55, %v522_v56 }
 0x20e   : > { %v881_v58 = vpop.f32.mrf.mxu1 }
 0x20f   : > { %v526_v59 = vmax.f32 %v523_v57, 0.0 }
 0x211   : > { %915 = vmatmul.mubr.f32.vlgmr.msra.gmra.mxu0 %v526_v59 }
 0x2d1   : > { %v616_v61 = vpop.f32.mrf.mxu0 }
 0x2d2   : > { %v617_v62 = vadd.f32 %v756_v60, %v616_v61 }
 0x2d3   : > { %v916_v63 = vpop.f32.mrf.mxu0 }
 0x2d4   : > { %v620_v0 = vsub.f32 0.0, %v617_v62 }
 0x2d6   : > { %v621_v1 = vmul.f32 1.442695, %v620_v0 }
 0x2d8   : > { %998 = vpow2.f32 %v621_v1 }
 0x2e5   : > { %v999_v2 = vpop.eup %998 }
 0x2e6   : > { %v623_v3 = vadd.f32 1.0, %v999_v2 }
 0x2e8   : > { %1000 = vrcp.f32 %v623_v3 }
 0x2f5   : > { %v1001_v4 = vpop.eup %1000 }
 0x2f6   : > { %626 = vst [vmem:[%s337_s18] sm:$0xff] %v1001_v4 }
 0x2f7   : > { %1121 = shalt.err (!%p1118_p9)
}
 0x2f8   : > { %s1122_s12 = scalar_lea.hbm %s1446_s21, 128  ;;  %s1126_s10 = scalar_lea.hbm %s1489_s7, 512 }
 0x2f9   : > { %p1123_p12 = scmp.ne.s32.totalorder %s1446_s21, %s1122_s12  ;;  %p1127_p10 = scmp.lt.s32.totalorder %s1446_s21, %s1489_s7 }
 0x2fa   : > { %p1128_p1 = scmp.lt.s32.totalorder %s1126_s10, %s1122_s12 }
 0x2fb   : > { %p1124_p8 = pnand %p1123_p12, %p1511_p6 }
 0x2fc   : > { %p1129_p2 = por %p1128_p1, %p1127_p10 }
 0x2fd   : > { %p1125_p5 = pneg %p1124_p8 }
 0x2ff   : > { %p1130_p4 = pnand %p1129_p2, %p1125_p5 }
 0x301   : > { %1133 = shalt.err (!%p1130_p4)
}
 0x302   : > { %931 = dma.vmem_to_hbm [thread:$0]  (%p1511_p6), %s642_s19, 128, %s1446_s21, %s628_s1  }
 0x303 PF: > { %p958_p11 = scmp.ge.s32.totalorder %s1180_s27, 2  ;;  %s653_s22 = sand.u32 1, %s1168_s24  }
 0x304   : > { %p1512_p13 = scmp.ne.s32.totalorder %s1497_s8, 0  ;;  %s654_s18 = scalar_lea.sflag [#allocation4], %s653_s22 }
 0x306   : > { %p948_p3 = pnand %p958_p11, %p1512_p13 }
 0x308   : > { %p949_p0 = pneg %p948_p3 }
 0x30a   : > { %1163 = dma.done.wait (%p949_p0), %s654_s18, 128  }
 0x30b   : > { %1165 = vsyncadd (%p949_p0), %s654_s18, 4294967168  ;;  %p22_p7 = scmp.ge.s32.totalorder %s1310_s14, 6   ;;  %s1513_s24 = smov %s1172_s25 }
 0x30c   : > { %s1514_s25 = smov %s1176_s26  ;;  %s1515_s26 = smov %s1320_s17 }
 0x30d   : > { %s1516_s27 = smov %s1310_s14  ;;  %24 = sbr.rel (!%p22_p7) target bundleno = 10 (0xa), region = 105 }
 0x312   :  { %659 = vsyncpa [#allocation3], 1 }
 0x313   :  { %661 = vsyncpa [#allocation3 + $0x1], 1 }
 0x314   :  { %662 = vsyncpa [#allocation6], 1 }
 0x315   :  { %663 = vsyncpa [#allocation9], 1 }
 0x316   :  { %664 = vsyncpa [#allocation4], 1 }
 0x317   :  { %666 = vsyncpa [#allocation4 + $0x1], 1 }

</bundles_post_ra>
